<compile_context>
chip_gen: v7x
topology: tpu7x:2x2x1
jax: 0.10.0
libtpu: 0.0.40
codegen_flags: <defaults>
</compile_context>

<pallas_src>
import functools

import jax
import jax.numpy as jnp
from jax.experimental import pallas as pl
from jax.experimental.pallas import tpu as pltpu

_LANES = 128
_SUBLANES = 8


def _capsule_loss_kernel(classes_ref, labels_ref, out_ref):
    """Accumulates the margin-loss partial sum into a resident (8,128) block."""
    k = pl.program_id(1)

    @pl.when(k == 0)
    def _init():
        out_ref[...] = jnp.zeros_like(out_ref)

    c = classes_ref[...].astype(jnp.float32)      # f32 math (v5e has no bf16 VPU)
    lbl = labels_ref[...].astype(jnp.float32)     # labels.float() in PyTorch

    left = jnp.maximum(0.9 - c, 0.0)              # F.relu(0.9 - classes)
    right = jnp.maximum(c - 0.1, 0.0)             # F.relu(classes - 0.1)
    left2 = left * left
    half_right2 = 0.5 * (right * right)
    # labels*left^2 + (1-labels)*0.5*right^2, folded to one mul/add pair.
    margin = half_right2 + lbl * (left2 - half_right2)

    rows = margin.shape[0]
    # Reduce the tile to one (8, 128) vreg with sublane-aligned VALU adds
    # (no XLU cross-lane work) and accumulate into the resident output block.
    out_ref[...] += jnp.sum(
        margin.reshape(rows // _SUBLANES, _SUBLANES, _LANES), axis=0)


def _num_tensorcores():
    """2 on v7x (2 TCs/chip), 1 on v5e/v6e; safe fallback of 1."""
    try:
        kind = jax.devices()[0].device_kind.lower()
    except Exception:
        return 1
    return 2 if ("v7" in kind or "tpu7" in kind) else 1


@functools.partial(jax.jit, static_argnums=(2, 3))
def _capsule_loss_impl(classes, labels, tile_rows_max, num_cores):
    assert classes.shape == labels.shape
    batch = labels.shape[0]            # PyTorch divides by labels.size(0)
    n = classes.size

    # Integer / bool one-hot labels are shipped as bf16 (exact for 0/1). Inside
    # this jitted wrapper the cast fuses with the mandatory pad/reshape copy
    # below, so the kernel reads 2 B/elem of labels with no extra HBM pass.
    if not jnp.issubdtype(labels.dtype, jnp.floating):
        labels = labels.astype(jnp.bfloat16)

    # Lane-dense, zero-padded [rows_pad, 128] layout. Zero padding is exact:
    # class=0, label=0  ->  0.5*relu(0 - 0.1)^2 == 0 contribution.
    rows = pl.cdiv(n, _LANES)
    rows8 = pl.cdiv(rows, _SUBLANES) * _SUBLANES

    # Two partial-sum blocks only when there are two TensorCores to run them.
    num_parts = num_cores if rows8 >= num_cores * _SUBLANES else 1

    # Adaptive tile size: tile_rows ~= rows8 / (num_parts * steps), 8-aligned,
    # capped at tile_rows_max. Padding waste is at most a few 8-row slivers.
    per_part = pl.cdiv(rows8, num_parts * _SUBLANES) * _SUBLANES
    steps = pl.cdiv(per_part, tile_rows_max)
    tile_rows = pl.cdiv(per_part, steps * _SUBLANES) * _SUBLANES
    rows_pad = num_parts * steps * tile_rows
    pad = rows_pad * _LANES - n

    classes2d = jnp.pad(classes.reshape(-1), (0, pad)).reshape(rows_pad, _LANES)
    labels2d = jnp.pad(labels.reshape(-1), (0, pad)).reshape(rows_pad, _LANES)

    partials = pl.pallas_call(
        _capsule_loss_kernel,
        out_shape=jax.ShapeDtypeStruct((num_parts * _SUBLANES, _LANES), jnp.float32),
        grid_spec=pltpu.PrefetchScalarGridSpec(
            num_scalar_prefetch=0,
            grid=(num_parts, steps),                 # reduction axis last
            in_specs=[
                pl.BlockSpec((tile_rows, _LANES), lambda p, k: (p * steps + k, 0)),
                pl.BlockSpec((tile_rows, _LANES), lambda p, k: (p * steps + k, 0)),
            ],
            out_specs=pl.BlockSpec((_SUBLANES, _LANES), lambda p, k: (p, 0)),
        ),
        compiler_params=pltpu.CompilerParams(
            dimension_semantics=("parallel", "arbitrary"),
            # Default tile uses ~8 MiB double-buffered; cap stays well under
            # v7x's 64 MiB physical VMEM even if tile_rows_max is raised.
            vmem_limit_bytes=48 * 1024 * 1024,
        ),
    )(classes2d, labels2d)

    # Tiny cross-lane finish (<= 2*8*128 floats) + /batch, fused by XLA.
    return jnp.sum(partials) / jnp.float32(batch)


def capsule_loss(classes, labels, *, tile_rows_max=4096):
    """Pallas implementation of CapsuleLoss.forward (margin loss only).

    `classes` / `labels` must have the batch as their leading dimension
    (matches PyTorch's `labels.size(0)` divisor).
    """
    # TODO(synk): nn.MSELoss reconstruction term omitted — with the module's
    # default reconstructions=0 / images=0 it never affects the returned loss.
    return _capsule_loss_impl(classes, labels, int(tile_rows_max),
                              _num_tensorcores())


def _reference(classes, labels):
    labels = labels.astype(jnp.float32)
    left = jnp.maximum(0.9 - classes, 0.0) ** 2
    right = jnp.maximum(classes - 0.1, 0.0) ** 2
    margin = labels * left + 0.5 * (1.0 - labels) * right
    return jnp.sum(margin) / classes.shape[0]


if __name__ == "__main__":
    key = jax.random.PRNGKey(0)
    k1, k2 = jax.random.split(key)

    # Small demo shape (capsule class probabilities in [0, 1], one-hot labels).
    B, NUM_CLASSES = 8, 16
    classes = jax.nn.sigmoid(jax.random.normal(k1, (B, NUM_CLASSES), jnp.float32))
    labels = jax.nn.one_hot(
        jax.random.randint(k2, (B,), 0, NUM_CLASSES), NUM_CLASSES, dtype=jnp.int32)
    loss = capsule_loss(classes, labels)
    jax.block_until_ready(loss)
    ref = _reference(classes, labels)
    assert jnp.allclose(loss, ref, rtol=1e-5, atol=1e-6), (loss, ref)

    # Unaligned shape with float labels: exercises the adaptive ragged tiling.
    B2, C2 = 1037, 10
    classes2 = jax.nn.sigmoid(jax.random.normal(k1, (B2, C2), jnp.float32))
    labels2 = jax.nn.one_hot(
        jax.random.randint(k2, (B2,), 0, C2), C2, dtype=jnp.float32)
    loss2 = capsule_loss(classes2, labels2)
    jax.block_until_ready(loss2)
    ref2 = _reference(classes2, labels2)
    assert jnp.allclose(loss2, ref2, rtol=1e-5, atol=1e-5), (loss2, ref2)

    # Multi-step accumulation path (small tile cap forces several grid steps).
    B3, C3 = 4096, 64
    classes3 = jax.nn.sigmoid(jax.random.normal(k1, (B3, C3), jnp.float32))
    labels3 = jax.nn.one_hot(
        jax.random.randint(k2, (B3,), 0, C3), C3, dtype=jnp.int32)
    loss3 = capsule_loss(classes3, labels3, tile_rows_max=256)
    jax.block_until_ready(loss3)
    ref3 = _reference(classes3, labels3)
    assert jnp.allclose(loss3, ref3, rtol=1e-4, atol=1e-4), (loss3, ref3)

    print("KERNEL_OK")
</pallas_src>

<mosaic_0001>
module attributes {stable_mosaic.version = 11 : i64} {
  func.func @_capsule_loss_kernel(%arg0: i32, %arg1: i32, %arg2: memref<8x128xf32, #tpu.memory_space<vmem>>, %arg3: memref<8x128xbf16, #tpu.memory_space<vmem>>, %arg4: memref<8x128xf32, #tpu.memory_space<vmem>>) attributes {dimension_semantics = [#tpu.dimension_semantics<parallel>, #tpu.dimension_semantics<arbitrary>], iteration_bounds = array<i64: 1, 1>, scalar_prefetch = 0 : i64, scratch_operands = 0 : i64, tpu.core_type = #tpu.core_type<tc>, window_params = [{transform_indices = @transform_0, window_bounds = array<i64: 8, 128>}, {transform_indices = @transform_1, window_bounds = array<i64: 8, 128>}, {transform_indices = @transform_2, window_bounds = array<i64: 8, 128>}]} {
    %c0_i32 = arith.constant 0 : i32
    %0 = arith.cmpi eq, %arg1, %c0_i32 : i32
    %1 = arith.extui %0 : i1 to i32
    %c0_i32_0 = arith.constant 0 : i32
    %2 = arith.cmpi ne, %1, %c0_i32_0 : i32
    scf.if %2 {
      %cst_13 = arith.constant 0.000000e+00 : f32
      %26 = vector.broadcast %cst_13 : f32 to vector<8x128xf32>
      %c0_14 = arith.constant 0 : index
      %c0_15 = arith.constant 0 : index
      %27 = vector.load %arg4[%c0_14, %c0_15] : memref<8x128xf32, #tpu.memory_space<vmem>>, vector<8x128xf32>
      tpu.vector_store %arg4[%c0_14, %c0_15], %26 {strides = array<i32>} : memref<8x128xf32, #tpu.memory_space<vmem>>, vector<8x128xf32>,
    } else {
    }
    %c0 = arith.constant 0 : index
    %c0_1 = arith.constant 0 : index
    %3 = vector.load %arg2[%c0, %c0_1] : memref<8x128xf32, #tpu.memory_space<vmem>>, vector<8x128xf32>
    %c0_2 = arith.constant 0 : index
    %c0_3 = arith.constant 0 : index
    %4 = vector.load %arg3[%c0_2, %c0_3] : memref<8x128xbf16, #tpu.memory_space<vmem>>, vector<8x128xbf16>
    %5 = arith.extf %4 : vector<8x128xbf16> to vector<8x128xf32>
    %cst = arith.constant 0.899999976 : f32
    %6 = vector.broadcast %cst : f32 to vector<8x128xf32>
    %7 = arith.subf %6, %3 : vector<8x128xf32>
    %cst_4 = arith.constant 0.000000e+00 : f32
    %8 = vector.broadcast %cst_4 : f32 to vector<8x128xf32>
    %9 = arith.maximumf %7, %8 : vector<8x128xf32>
    %cst_5 = arith.constant 1.000000e-01 : f32
    %10 = vector.broadcast %cst_5 : f32 to vector<8x128xf32>
    %11 = arith.subf %3, %10 : vector<8x128xf32>
    %cst_6 = arith.constant 0.000000e+00 : f32
    %12 = vector.broadcast %cst_6 : f32 to vector<8x128xf32>
    %13 = arith.maximumf %11, %12 : vector<8x128xf32>
    %14 = arith.mulf %9, %9 : vector<8x128xf32>
    %15 = arith.mulf %13, %13 : vector<8x128xf32>
    %cst_7 = arith.constant 5.000000e-01 : f32
    %16 = vector.broadcast %cst_7 : f32 to vector<8x128xf32>
    %17 = arith.mulf %16, %15 : vector<8x128xf32>
    %18 = arith.subf %14, %17 : vector<8x128xf32>
    %19 = arith.mulf %5, %18 : vector<8x128xf32>
    %20 = arith.addf %17, %19 : vector<8x128xf32>
    %c0_8 = arith.constant 0 : index
    %c0_9 = arith.constant 0 : index
    %21 = vector.load %arg4[%c0_8, %c0_9] : memref<8x128xf32, #tpu.memory_space<vmem>>, vector<8x128xf32>
    %22 = vector.shape_cast %20 : vector<8x128xf32> to vector<1x8x128xf32>
    %cst_10 = arith.constant dense<0.000000e+00> : vector<8x128xf32>
    %23 = vector.multi_reduction <add>, %22, %cst_10 [0] : vector<1x8x128xf32> to vector<8x128xf32>
    %24 = arith.addf %21, %23 : vector<8x128xf32>
    %c0_11 = arith.constant 0 : index
    %c0_12 = arith.constant 0 : index
    %25 = vector.load %arg4[%c0_11, %c0_12] : memref<8x128xf32, #tpu.memory_space<vmem>>, vector<8x128xf32>
    tpu.vector_store %arg4[%c0_11, %c0_12], %24 {strides = array<i32>} : memref<8x128xf32, #tpu.memory_space<vmem>>, vector<8x128xf32>,
    return
  }
  func.func @transform_0(%arg0: i32, %arg1: i32) -> (i32, i32) {
    %c1_i32 = arith.constant 1 : i32
    %0 = arith.muli %arg0, %c1_i32 : i32
    %1 = arith.addi %0, %arg1 : i32
    %c0_i32 = arith.constant 0 : i32
    %c0_i32_0 = arith.constant 0 : i32
    return %1, %c0_i32 : i32, i32
  }
  func.func @transform_1(%arg0: i32, %arg1: i32) -> (i32, i32) {
    %c1_i32 = arith.constant 1 : i32
    %0 = arith.muli %arg0, %c1_i32 : i32
    %1 = arith.addi %0, %arg1 : i32
    %c0_i32 = arith.constant 0 : i32
    %c0_i32_0 = arith.constant 0 : i32
    return %1, %c0_i32 : i32, i32
  }
  func.func @transform_2(%arg0: i32, %arg1: i32) -> (i32, i32) {
    %c0_i32 = arith.constant 0 : i32
    %c0_i32_0 = arith.constant 0 : i32
    return %arg0, %c0_i32 : i32, i32
  }
}

</mosaic_0001>

<bundles_post_ra>
// kernel: _capsule_loss_impl.1
= control target key start
LH: loop header
LB: loop body
LE: loop exit
PB: predicated region body
PF: predicated region fallthrough
CT: control target
= control target key end

     0   :  { %s109_s0 = inlined_call_operand.vmem [shape: f32[8,128], index: 0, kind: input, shape index: {}]   ;;  %s110_s1 = inlined_call_operand.vmem [shape: bf16[8,128], index: 1, kind: input, shape index: {}]   ;;  %s111_s2 = inlined_call_operand.vmem [shape: f32[8,128], index: 2, kind: output, shape index: {}]  }
   0x1   :  { %v50_v0 = vld [vmem:[%s109_s0] sm:$0xff] }
   0x2   :  { %v53_v1 = vsub.f32 0.9, %v50_v0  ;;  %v83_v2 = vadd.f32 -0.1, %v50_v0  ;;  %v51_v5 = vld [vmem:[%s110_s1] sm:$0xf] }
   0x3   :  { %v52_v8 = vunpack.c.l.bf16 %v51_v5 }
   0x4   :  { %v54_v3 = vmax.f32 %v53_v1, 0.0  ;;  %v56_v4 = vmax.f32 %v83_v2, 0.0 }
   0x6   :  { %v57_v6 = vmul.f32 %v54_v3, %v54_v3  ;;  %v58_v7 = vmul.f32 %v56_v4, %v56_v4 }
   0x8   :  { %v59_v9 = vmul.f32 0.5, %v58_v7 }
   0xa   :  { %v60_v10 = vsub.f32 %v57_v6, %v59_v9 }
   0xc   :  { %v61_v11 = vmul.f32 %v60_v10, %v52_v8 }
   0xe   :  { %v62_v12 = vadd.f32 %v61_v11, %v59_v9 }
  0x10   :  { %66 = vst [vmem:[%s111_s2] sm:$0xff] %v62_v12 }

</bundles_post_ra>
